<compile_context>
chip_gen: v5e
topology: v5e:2x2
jax: 0.10.0
libtpu: 0.0.40
codegen_flags: <defaults>
</compile_context>

<pallas_src>
import math

import jax
import jax.numpy as jnp
from jax.experimental import pallas as pl
from jax.experimental.pallas import tpu as pltpu

FEATURES = 32                       # `features` is a free variable in the spec
LAYER_SIZES = [FEATURES, 30, 60, 90, 120, 150, 180, 1]
NUM_LAYERS = len(LAYER_SIZES) - 1   # 7 linear layers
NUM_MATMUL_LAYERS = NUM_LAYERS - 1  # last layer is done as a VPU reduction

LANE = 128


def _round_up(x, m):
    return ((x + m - 1) // m) * m


# Padded widths: input features kept as-is (full block), hidden widths padded
# to multiples of 128 lanes, final output width stays 1 (reduction layer).
PADDED_SIZES = (
    [LAYER_SIZES[0]]
    + [_round_up(s, LANE) for s in LAYER_SIZES[1:-1]]
    + [1]
)


def regressor_kernel(x_ref, *refs):
    """Fused MLP forward for one batch tile.

    refs = (w1, b1, ..., w6, b6, w7_row, b7_smem, out_ref)
      wi      : (in_pad_i, out_pad_i)  compute_dtype  VMEM (resident)
      bi      : (1, out_pad_i)         f32            VMEM (resident)
      w7_row  : (1, in_pad_7)          f32            VMEM (resident)
      b7_smem : (1,)                   f32            SMEM scalar
      out_ref : (TILE_M, 1)            f32            VMEM
    """
    out_ref = refs[-1]
    wb = refs[:-1]

    h = x_ref[...]                       # already in compute dtype (bf16/f32)
    for i in range(NUM_MATMUL_LAYERS):
        w = wb[2 * i][...]               # compute dtype (bf16 MXU fast path)
        b = wb[2 * i + 1][...]           # f32
        # MXU matmul with f32 accumulation; bias add + ReLU on the f32
        # accumulator (portable to v5e's f32-only VPU), then one cast back to
        # the compute dtype so the spilled activation is half-width.
        acc = jnp.dot(h, w, preferred_element_type=jnp.float32)
        h = jnp.maximum(acc + b, 0.0).astype(w.dtype)

    # Final layer (out_features == 1): VPU multiply + XLU lane reduction
    # instead of a single-column MXU matmul.
    w_last = wb[2 * NUM_MATMUL_LAYERS][...]        # (1, in_pad) f32
    b_last = wb[2 * NUM_MATMUL_LAYERS + 1][0]      # scalar f32 from SMEM
    out = jnp.sum(h.astype(jnp.float32) * w_last, axis=-1, keepdims=True) + b_last
    out_ref[...] = out.astype(out_ref.dtype)


def _pack_params(params, compute_dtype):
    """Zero-pad weights/biases to lane-dense shapes and build their specs."""
    flat = []
    specs = []
    for i in range(NUM_MATMUL_LAYERS):
        w, b = params[i]                       # w: (in, out), b: (out,)
        in_d, out_d = w.shape
        in_pad, out_pad = PADDED_SIZES[i], PADDED_SIZES[i + 1]
        w_p = jnp.zeros((in_pad, out_pad), compute_dtype)
        w_p = w_p.at[:in_d, :out_d].set(w.astype(compute_dtype))
        b_p = jnp.zeros((1, out_pad), jnp.float32)
        b_p = b_p.at[0, :out_d].set(b.astype(jnp.float32))
        flat += [w_p, b_p]
        specs += [
            pl.BlockSpec((in_pad, out_pad), lambda i: (0, 0),
                         memory_space=pltpu.MemorySpace.VMEM),
            pl.BlockSpec((1, out_pad), lambda i: (0, 0),
                         memory_space=pltpu.MemorySpace.VMEM),
        ]

    # Final (180 -> 1) layer stored as a single padded f32 row + SMEM scalar.
    w, b = params[-1]                          # w: (180, 1), b: (1,)
    in_pad = PADDED_SIZES[-2]
    w_row = jnp.zeros((1, in_pad), jnp.float32)
    w_row = w_row.at[0, : w.shape[0]].set(w[:, 0].astype(jnp.float32))
    b_last = b.astype(jnp.float32).reshape(1,)
    flat += [w_row, b_last]
    specs += [
        pl.BlockSpec((1, in_pad), lambda i: (0, 0),
                     memory_space=pltpu.MemorySpace.VMEM),
        pl.BlockSpec(memory_space=pltpu.MemorySpace.SMEM),   # scalar bias
    ]
    return flat, specs


def regressor_forward(x, params, *, tile_m=1024, compute_dtype=jnp.bfloat16):
    """x: (B, FEATURES) f32.  params: 7 unpadded (w:(in,out), b:(out,)) pairs.

    compute_dtype=jnp.bfloat16 (default) uses the bf16 MXU path on all TPU
    generations with f32 accumulation; compute_dtype=jnp.float32 is the
    reference-exact path.
    """
    batch = x.shape[0]
    assert x.shape[1] == FEATURES

    itemsize = jnp.dtype(compute_dtype).itemsize
    sub = 8 if itemsize >= 4 else 16          # sublane alignment (bf16 packs x2)

    # Pick a sublane-aligned batch tile; cap it so the grid has >= 2 steps
    # whenever the batch permits (lets v7x shard tiles across both TCs).
    batch_pad = _round_up(batch, sub)
    if batch_pad >= 2 * sub:
        cap = _round_up((batch_pad + 1) // 2, sub)
    else:
        cap = batch_pad
    tile_m = max(sub, min(_round_up(tile_m, sub), cap))

    padded_batch = _round_up(batch, tile_m)
    if padded_batch != batch:
        x = jnp.pad(x, ((0, padded_batch - batch), (0, 0)))
    x = x.astype(compute_dtype)               # cast in wrapper: halves HBM bytes
    grid = (padded_batch // tile_m,)

    flat_params, param_specs = _pack_params(params, compute_dtype)

    in_specs = [
        pl.BlockSpec((tile_m, FEATURES), lambda i: (i, 0),
                     memory_space=pltpu.MemorySpace.VMEM)
    ] + param_specs
    out_specs = pl.BlockSpec((tile_m, 1), lambda i: (i, 0),
                             memory_space=pltpu.MemorySpace.VMEM)

    # VMEM budget derived from actual footprint (double-buffered x/out blocks,
    # double-buffered resident weights, a few live activation temporaries),
    # clamped under 48 MiB so large tiles stay safe on v7x's 64 MiB/TC.
    weight_bytes = sum(int(a.size) * a.dtype.itemsize for a in flat_params)
    max_width = max(PADDED_SIZES[1:-1])
    act_bytes = tile_m * max_width * (4 + itemsize)      # f32 acc + packed act
    x_blk = tile_m * FEATURES * itemsize
    out_blk = tile_m * LANE * 4                           # (tile_m,1) pads lanes
    vmem_est = 2 * weight_bytes + 2 * x_blk + 2 * out_blk + 4 * act_bytes
    vmem_limit = int(min(max(vmem_est * 1.5 + (4 << 20), 16 << 20), 48 << 20))

    flops = (
        2 * padded_batch
        * sum(PADDED_SIZES[i] * PADDED_SIZES[i + 1]
              for i in range(NUM_MATMUL_LAYERS))
        + 2 * padded_batch * PADDED_SIZES[-2]            # final VPU reduce layer
    )
    bytes_accessed = int(
        x.size * x.dtype.itemsize
        + weight_bytes
        + padded_batch * 4
    )

    out = pl.pallas_call(
        regressor_kernel,
        out_shape=jax.ShapeDtypeStruct((padded_batch, 1), jnp.float32),
        grid=grid,
        in_specs=in_specs,
        out_specs=out_specs,
        compiler_params=pltpu.CompilerParams(
            dimension_semantics=("parallel",),           # megacore-shard batch
            vmem_limit_bytes=vmem_limit,
        ),
        cost_estimate=pl.CostEstimate(
            flops=flops, transcendentals=0, bytes_accessed=bytes_accessed),
    )(x, *flat_params)

    return out[:batch]


def init_params(key):
    """PyTorch nn.Linear default init: U(-1/sqrt(fan_in), 1/sqrt(fan_in))."""
    params = []
    for i in range(NUM_LAYERS):
        fan_in = LAYER_SIZES[i]
        fan_out = LAYER_SIZES[i + 1]
        key, kw, kb = jax.random.split(key, 3)
        bound = 1.0 / math.sqrt(fan_in)
        w = jax.random.uniform(kw, (fan_in, fan_out), jnp.float32,
                               minval=-bound, maxval=bound)
        b = jax.random.uniform(kb, (fan_out,), jnp.float32,
                               minval=-bound, maxval=bound)
        params.append((w, b))
    return params


def reference_forward(x, params):
    """Pure-JAX reference for correctness checking."""
    h = x
    for i, (w, b) in enumerate(params):
        h = jnp.dot(h, w, preferred_element_type=jnp.float32) + b
        if i < NUM_LAYERS - 1:
            h = jnp.maximum(h, 0.0)
    return h


if __name__ == "__main__":
    key = jax.random.PRNGKey(0)
    key, kx = jax.random.split(key)

    batch = 64
    x = jax.random.normal(kx, (batch, FEATURES), jnp.float32)
    params = init_params(key)
    ref = reference_forward(x, params)

    # Default path: bf16 MXU, f32 accumulation, >=2 grid steps (tile_m capped
    # to padded_batch/2 so both v7x TensorCores get work).
    out_bf16 = jax.block_until_ready(regressor_forward(x, params))
    assert out_bf16.shape == (batch, 1), out_bf16.shape
    assert jnp.allclose(out_bf16, ref, atol=3e-1, rtol=3e-1), (
        f"bf16 mismatch: max abs err = {jnp.max(jnp.abs(out_bf16 - ref))}")

    # f32 reference-exact path with a multi-step grid (tile_m=16 -> 4 steps).
    out_f32 = jax.block_until_ready(
        regressor_forward(x, params, tile_m=16, compute_dtype=jnp.float32))
    assert jnp.allclose(out_f32, ref, atol=1e-4, rtol=1e-4), (
        f"f32 mismatch: max abs err = {jnp.max(jnp.abs(out_f32 - ref))}")

    # Ragged batch (37 rows, not a tile multiple) exercises pad + slice path.
    out_ragged = jax.block_until_ready(
        regressor_forward(x[:37], params, tile_m=16,
                          compute_dtype=jnp.float32))
    assert out_ragged.shape == (37, 1)
    assert jnp.allclose(out_ragged, ref[:37], atol=1e-4, rtol=1e-4), (
        "ragged-batch mismatch")

    print("KERNEL_OK")
</pallas_src>

<mosaic_0001>
module attributes {stable_mosaic.version = 11 : i64} {
  func.func @regressor_kernel(%arg0: i32, %arg1: memref<32x32xbf16, #tpu.memory_space<vmem>>, %arg2: memref<32x128xbf16, #tpu.memory_space<vmem>>, %arg3: memref<1x128xf32, #tpu.memory_space<vmem>>, %arg4: memref<128x128xbf16, #tpu.memory_space<vmem>>, %arg5: memref<1x128xf32, #tpu.memory_space<vmem>>, %arg6: memref<128x128xbf16, #tpu.memory_space<vmem>>, %arg7: memref<1x128xf32, #tpu.memory_space<vmem>>, %arg8: memref<128x128xbf16, #tpu.memory_space<vmem>>, %arg9: memref<1x128xf32, #tpu.memory_space<vmem>>, %arg10: memref<128x256xbf16, #tpu.memory_space<vmem>>, %arg11: memref<1x256xf32, #tpu.memory_space<vmem>>, %arg12: memref<256x256xbf16, #tpu.memory_space<vmem>>, %arg13: memref<1x256xf32, #tpu.memory_space<vmem>>, %arg14: memref<1x256xf32, #tpu.memory_space<vmem>>, %arg15: memref<1xf32, #tpu.memory_space<smem>>, %arg16: memref<32x1xf32, #tpu.memory_space<vmem>>) attributes {dimension_semantics = [#tpu.dimension_semantics<parallel>], iteration_bounds = array<i64: 2>, scalar_prefetch = 0 : i64, scratch_operands = 0 : i64, tpu.core_type = #tpu.core_type<tc>, window_params = [{transform_indices = @transform_0, window_bounds = array<i64: 32, 32>}, {pipeline_mode = #tpu.pipeline_mode<synchronous>, transform_indices = @transform_1, window_bounds = array<i64: 32, 128>}, {pipeline_mode = #tpu.pipeline_mode<synchronous>, transform_indices = @transform_2, window_bounds = array<i64: 1, 128>}, {pipeline_mode = #tpu.pipeline_mode<synchronous>, transform_indices = @transform_3, window_bounds = array<i64: 128, 128>}, {pipeline_mode = #tpu.pipeline_mode<synchronous>, transform_indices = @transform_4, window_bounds = array<i64: 1, 128>}, {pipeline_mode = #tpu.pipeline_mode<synchronous>, transform_indices = @transform_5, window_bounds = array<i64: 128, 128>}, {pipeline_mode = #tpu.pipeline_mode<synchronous>, transform_indices = @transform_6, window_bounds = array<i64: 1, 128>}, {pipeline_mode = #tpu.pipeline_mode<synchronous>, transform_indices = @transform_7, window_bounds = array<i64: 128, 128>}, {pipeline_mode = #tpu.pipeline_mode<synchronous>, transform_indices = @transform_8, window_bounds = array<i64: 1, 128>}, {pipeline_mode = #tpu.pipeline_mode<synchronous>, transform_indices = @transform_9, window_bounds = array<i64: 128, 256>}, {pipeline_mode = #tpu.pipeline_mode<synchronous>, transform_indices = @transform_10, window_bounds = array<i64: 1, 256>}, {pipeline_mode = #tpu.pipeline_mode<synchronous>, transform_indices = @transform_11, window_bounds = array<i64: 256, 256>}, {pipeline_mode = #tpu.pipeline_mode<synchronous>, transform_indices = @transform_12, window_bounds = array<i64: 1, 256>}, {pipeline_mode = #tpu.pipeline_mode<synchronous>, transform_indices = @transform_13, window_bounds = array<i64: 1, 256>}, {transform_indices = @transform_14, window_bounds = array<i64: 1>}, {transform_indices = @transform_15, window_bounds = array<i64: 32, 1>}]} {
    %c0 = arith.constant 0 : index
    %c0_0 = arith.constant 0 : index
    %0 = vector.load %arg1[%c0, %c0_0] : memref<32x32xbf16, #tpu.memory_space<vmem>>, vector<32x32xbf16>
    %c0_1 = arith.constant 0 : index
    %c0_2 = arith.constant 0 : index
    %1 = vector.load %arg2[%c0_1, %c0_2] : memref<32x128xbf16, #tpu.memory_space<vmem>>, vector<32x128xbf16>
    %c0_3 = arith.constant 0 : index
    %c0_4 = arith.constant 0 : index
    %2 = vector.load %arg3[%c0_3, %c0_4] : memref<1x128xf32, #tpu.memory_space<vmem>>, vector<1x128xf32>
    %cst = arith.constant dense<0.000000e+00> : vector<32x128xf32>
    %3 = tpu.matmul %0, %1, %cst {dimension_numbers = #tpu.dot_dimension_numbers<[1], [0], [0], [1], [0, 0, 1, 1], [], []>} : vector<32x32xbf16>, vector<32x128xbf16>, vector<32x128xf32> -> vector<32x128xf32>
    %4 = vector.broadcast %2 : vector<1x128xf32> to vector<32x128xf32>
    %5 = arith.addf %3, %4 : vector<32x128xf32>
    %cst_5 = arith.constant 0.000000e+00 : f32
    %6 = vector.broadcast %cst_5 : f32 to vector<32x128xf32>
    %7 = arith.maximumf %5, %6 : vector<32x128xf32>
    %8 = arith.truncf %7 : vector<32x128xf32> to vector<32x128xbf16>
    %c0_6 = arith.constant 0 : index
    %c0_7 = arith.constant 0 : index
    %9 = vector.load %arg4[%c0_6, %c0_7] : memref<128x128xbf16, #tpu.memory_space<vmem>>, vector<128x128xbf16>
    %c0_8 = arith.constant 0 : index
    %c0_9 = arith.constant 0 : index
    %10 = vector.load %arg5[%c0_8, %c0_9] : memref<1x128xf32, #tpu.memory_space<vmem>>, vector<1x128xf32>
    %cst_10 = arith.constant dense<0.000000e+00> : vector<32x128xf32>
    %11 = tpu.matmul %8, %9, %cst_10 {dimension_numbers = #tpu.dot_dimension_numbers<[1], [0], [0], [1], [0, 0, 1, 1], [], []>} : vector<32x128xbf16>, vector<128x128xbf16>, vector<32x128xf32> -> vector<32x128xf32>
    %12 = vector.broadcast %10 : vector<1x128xf32> to vector<32x128xf32>
    %13 = arith.addf %11, %12 : vector<32x128xf32>
    %cst_11 = arith.constant 0.000000e+00 : f32
    %14 = vector.broadcast %cst_11 : f32 to vector<32x128xf32>
    %15 = arith.maximumf %13, %14 : vector<32x128xf32>
    %16 = arith.truncf %15 : vector<32x128xf32> to vector<32x128xbf16>
    %c0_12 = arith.constant 0 : index
    %c0_13 = arith.constant 0 : index
    %17 = vector.load %arg6[%c0_12, %c0_13] : memref<128x128xbf16, #tpu.memory_space<vmem>>, vector<128x128xbf16>
    %c0_14 = arith.constant 0 : index
    %c0_15 = arith.constant 0 : index
    %18 = vector.load %arg7[%c0_14, %c0_15] : memref<1x128xf32, #tpu.memory_space<vmem>>, vector<1x128xf32>
    %cst_16 = arith.constant dense<0.000000e+00> : vector<32x128xf32>
    %19 = tpu.matmul %16, %17, %cst_16 {dimension_numbers = #tpu.dot_dimension_numbers<[1], [0], [0], [1], [0, 0, 1, 1], [], []>} : vector<32x128xbf16>, vector<128x128xbf16>, vector<32x128xf32> -> vector<32x128xf32>
    %20 = vector.broadcast %18 : vector<1x128xf32> to vector<32x128xf32>
    %21 = arith.addf %19, %20 : vector<32x128xf32>
    %cst_17 = arith.constant 0.000000e+00 : f32
    %22 = vector.broadcast %cst_17 : f32 to vector<32x128xf32>
    %23 = arith.maximumf %21, %22 : vector<32x128xf32>
    %24 = arith.truncf %23 : vector<32x128xf32> to vector<32x128xbf16>
    %c0_18 = arith.constant 0 : index
    %c0_19 = arith.constant 0 : index
    %25 = vector.load %arg8[%c0_18, %c0_19] : memref<128x128xbf16, #tpu.memory_space<vmem>>, vector<128x128xbf16>
    %c0_20 = arith.constant 0 : index
    %c0_21 = arith.constant 0 : index
    %26 = vector.load %arg9[%c0_20, %c0_21] : memref<1x128xf32, #tpu.memory_space<vmem>>, vector<1x128xf32>
    %cst_22 = arith.constant dense<0.000000e+00> : vector<32x128xf32>
    %27 = tpu.matmul %24, %25, %cst_22 {dimension_numbers = #tpu.dot_dimension_numbers<[1], [0], [0], [1], [0, 0, 1, 1], [], []>} : vector<32x128xbf16>, vector<128x128xbf16>, vector<32x128xf32> -> vector<32x128xf32>
    %28 = vector.broadcast %26 : vector<1x128xf32> to vector<32x128xf32>
    %29 = arith.addf %27, %28 : vector<32x128xf32>
    %cst_23 = arith.constant 0.000000e+00 : f32
    %30 = vector.broadcast %cst_23 : f32 to vector<32x128xf32>
    %31 = arith.maximumf %29, %30 : vector<32x128xf32>
    %32 = arith.truncf %31 : vector<32x128xf32> to vector<32x128xbf16>
    %c0_24 = arith.constant 0 : index
    %c0_25 = arith.constant 0 : index
    %33 = vector.load %arg10[%c0_24, %c0_25] : memref<128x256xbf16, #tpu.memory_space<vmem>>, vector<128x256xbf16>
    %c0_26 = arith.constant 0 : index
    %c0_27 = arith.constant 0 : index
    %34 = vector.load %arg11[%c0_26, %c0_27] : memref<1x256xf32, #tpu.memory_space<vmem>>, vector<1x256xf32>
    %cst_28 = arith.constant dense<0.000000e+00> : vector<32x256xf32>
    %35 = tpu.matmul %32, %33, %cst_28 {dimension_numbers = #tpu.dot_dimension_numbers<[1], [0], [0], [1], [0, 0, 1, 1], [], []>} : vector<32x128xbf16>, vector<128x256xbf16>, vector<32x256xf32> -> vector<32x256xf32>
    %36 = vector.broadcast %34 : vector<1x256xf32> to vector<32x256xf32>
    %37 = arith.addf %35, %36 : vector<32x256xf32>
    %cst_29 = arith.constant 0.000000e+00 : f32
    %38 = vector.broadcast %cst_29 : f32 to vector<32x256xf32>
    %39 = arith.maximumf %37, %38 : vector<32x256xf32>
    %40 = arith.truncf %39 : vector<32x256xf32> to vector<32x256xbf16>
    %c0_30 = arith.constant 0 : index
    %c0_31 = arith.constant 0 : index
    %41 = vector.load %arg12[%c0_30, %c0_31] : memref<256x256xbf16, #tpu.memory_space<vmem>>, vector<256x256xbf16>
    %c0_32 = arith.constant 0 : index
    %c0_33 = arith.constant 0 : index
    %42 = vector.load %arg13[%c0_32, %c0_33] : memref<1x256xf32, #tpu.memory_space<vmem>>, vector<1x256xf32>
    %cst_34 = arith.constant dense<0.000000e+00> : vector<32x256xf32>
    %43 = tpu.matmul %40, %41, %cst_34 {dimension_numbers = #tpu.dot_dimension_numbers<[1], [0], [0], [1], [0, 0, 1, 1], [], []>} : vector<32x256xbf16>, vector<256x256xbf16>, vector<32x256xf32> -> vector<32x256xf32>
    %44 = vector.broadcast %42 : vector<1x256xf32> to vector<32x256xf32>
    %45 = arith.addf %43, %44 : vector<32x256xf32>
    %cst_35 = arith.constant 0.000000e+00 : f32
    %46 = vector.broadcast %cst_35 : f32 to vector<32x256xf32>
    %47 = arith.maximumf %45, %46 : vector<32x256xf32>
    %48 = arith.truncf %47 : vector<32x256xf32> to vector<32x256xbf16>
    %c0_36 = arith.constant 0 : index
    %c0_37 = arith.constant 0 : index
    %49 = vector.load %arg14[%c0_36, %c0_37] : memref<1x256xf32, #tpu.memory_space<vmem>>, vector<1x256xf32>
    %c0_38 = arith.constant 0 : index
    %50 = memref.load %arg15[%c0_38] : memref<1xf32, #tpu.memory_space<smem>>
    %51 = arith.extf %48 : vector<32x256xbf16> to vector<32x256xf32>
    %52 = vector.broadcast %49 : vector<1x256xf32> to vector<32x256xf32>
    %53 = arith.mulf %51, %52 : vector<32x256xf32>
    %cst_39 = arith.constant dense<0.000000e+00> : vector<32xf32>
    %54 = vector.multi_reduction <add>, %53, %cst_39 [1] : vector<32x256xf32> to vector<32xf32>
    %55 = vector.shape_cast %54 : vector<32xf32> to vector<32x1xf32>
    %56 = vector.broadcast %50 : f32 to vector<32x1xf32>
    %57 = arith.addf %55, %56 : vector<32x1xf32>
    %c0_40 = arith.constant 0 : index
    %c0_41 = arith.constant 0 : index
    %58 = vector.load %arg16[%c0_40, %c0_41] : memref<32x1xf32, #tpu.memory_space<vmem>>, vector<32x1xf32>
    tpu.vector_store %arg16[%c0_40, %c0_41], %57 {strides = array<i32>} : memref<32x1xf32, #tpu.memory_space<vmem>>, vector<32x1xf32>,
    return
  }
  func.func @transform_0(%arg0: i32) -> (i32, i32) {
    %c0_i32 = arith.constant 0 : i32
    %c0_i32_0 = arith.constant 0 : i32
    return %arg0, %c0_i32 : i32, i32
  }
  func.func @transform_1(%arg0: i32) -> (i32, i32) {
    %c0_i32 = arith.constant 0 : i32
    %c0_i32_0 = arith.constant 0 : i32
    %c0_i32_1 = arith.constant 0 : i32
    return %c0_i32, %c0_i32_0 : i32, i32
  }
  func.func @transform_2(%arg0: i32) -> (i32, i32) {
    %c0_i32 = arith.constant 0 : i32
    %c0_i32_0 = arith.constant 0 : i32
    %c0_i32_1 = arith.constant 0 : i32
    return %c0_i32, %c0_i32_0 : i32, i32
  }
  func.func @transform_3(%arg0: i32) -> (i32, i32) {
    %c0_i32 = arith.constant 0 : i32
    %c0_i32_0 = arith.constant 0 : i32
    %c0_i32_1 = arith.constant 0 : i32
    return %c0_i32, %c0_i32_0 : i32, i32
  }
  func.func @transform_4(%arg0: i32) -> (i32, i32) {
    %c0_i32 = arith.constant 0 : i32
    %c0_i32_0 = arith.constant 0 : i32
    %c0_i32_1 = arith.constant 0 : i32
    return %c0_i32, %c0_i32_0 : i32, i32
  }
  func.func @transform_5(%arg0: i32) -> (i32, i32) {
    %c0_i32 = arith.constant 0 : i32
    %c0_i32_0 = arith.constant 0 : i32
    %c0_i32_1 = arith.constant 0 : i32
    return %c0_i32, %c0_i32_0 : i32, i32
  }
  func.func @transform_6(%arg0: i32) -> (i32, i32) {
    %c0_i32 = arith.constant 0 : i32
    %c0_i32_0 = arith.constant 0 : i32
    %c0_i32_1 = arith.constant 0 : i32
    return %c0_i32, %c0_i32_0 : i32, i32
  }
  func.func @transform_7(%arg0: i32) -> (i32, i32) {
    %c0_i32 = arith.constant 0 : i32
    %c0_i32_0 = arith.constant 0 : i32
    %c0_i32_1 = arith.constant 0 : i32
    return %c0_i32, %c0_i32_0 : i32, i32
  }
  func.func @transform_8(%arg0: i32) -> (i32, i32) {
    %c0_i32 = arith.constant 0 : i32
    %c0_i32_0 = arith.constant 0 : i32
    %c0_i32_1 = arith.constant 0 : i32
    return %c0_i32, %c0_i32_0 : i32, i32
  }
  func.func @transform_9(%arg0: i32) -> (i32, i32) {
    %c0_i32 = arith.constant 0 : i32
    %c0_i32_0 = arith.constant 0 : i32
    %c0_i32_1 = arith.constant 0 : i32
    return %c0_i32, %c0_i32_0 : i32, i32
  }
  func.func @transform_10(%arg0: i32) -> (i32, i32) {
    %c0_i32 = arith.constant 0 : i32
    %c0_i32_0 = arith.constant 0 : i32
    %c0_i32_1 = arith.constant 0 : i32
    return %c0_i32, %c0_i32_0 : i32, i32
  }
  func.func @transform_11(%arg0: i32) -> (i32, i32) {
    %c0_i32 = arith.constant 0 : i32
    %c0_i32_0 = arith.constant 0 : i32
    %c0_i32_1 = arith.constant 0 : i32
    return %c0_i32, %c0_i32_0 : i32, i32
  }
  func.func @transform_12(%arg0: i32) -> (i32, i32) {
    %c0_i32 = arith.constant 0 : i32
    %c0_i32_0 = arith.constant 0 : i32
    %c0_i32_1 = arith.constant 0 : i32
    return %c0_i32, %c0_i32_0 : i32, i32
  }
  func.func @transform_13(%arg0: i32) -> (i32, i32) {
    %c0_i32 = arith.constant 0 : i32
    %c0_i32_0 = arith.constant 0 : i32
    %c0_i32_1 = arith.constant 0 : i32
    return %c0_i32, %c0_i32_0 : i32, i32
  }
  func.func @transform_14(%arg0: i32) -> i32 {
    %c0_i32 = arith.constant 0 : i32
    %c0_i32_0 = arith.constant 0 : i32
    return %c0_i32 : i32
  }
  func.func @transform_15(%arg0: i32) -> (i32, i32) {
    %c0_i32 = arith.constant 0 : i32
    %c0_i32_0 = arith.constant 0 : i32
    return %arg0, %c0_i32 : i32, i32
  }
}

</mosaic_0001>

<bundles_post_ra>
// kernel: tpu_custom_call.1
= control target key start
LH: loop header
LB: loop body
LE: loop exit
PB: predicated region body
PF: predicated region fallthrough
CT: control target
= control target key end

     0   :  { %s2386_s0 = inlined_call_operand.vmem [shape: bf16[64,32], index: 0, kind: input, shape index: {}]   ;;  %s2387_s1 = inlined_call_operand.vmem [shape: bf16[32,128], index: 1, kind: input, shape index: {}]   ;;  %s2388_s2 = inlined_call_operand.vmem [shape: f32[1,128], index: 2, kind: input, shape index: {}]   ;;  %s2389_s3 = inlined_call_operand.hbm [shape: bf16[128,128], index: 3, kind: input, shape index: {}]   ;;  %s2390_s4 = inlined_call_operand.vmem [shape: f32[1,128], index: 4, kind: input, shape index: {}]   ;;  %s2391_s5 = inlined_call_operand.hbm [shape: bf16[128,128], index: 5, kind: input, shape index: {}]   ;;  %s2392_s6 = inlined_call_operand.vmem [shape: f32[1,128], index: 6, kind: input, shape index: {}]   ;;  %s2393_s7 = inlined_call_operand.hbm [shape: bf16[128,128], index: 7, kind: input, shape index: {}]   ;;  %s2394_s8 = inlined_call_operand.vmem [shape: f32[1,128], index: 8, kind: input, shape index: {}]   ;;  %s2395_s9 = inlined_call_operand.hbm [shape: bf16[128,256], index: 9, kind: input, shape index: {}]   ;;  %s2396_s10 = inlined_call_operand.vmem [shape: f32[1,256], index: 10, kind: input, shape index: {}]   ;;  %s2397_s11 = inlined_call_operand.hbm [shape: bf16[256,256], index: 11, kind: input, shape index: {}]   ;;  %s2398_s12 = inlined_call_operand.vmem [shape: f32[1,256], index: 12, kind: input, shape index: {}]   ;;  %s2399_s13 = inlined_call_operand.vmem [shape: f32[1,256], index: 13, kind: input, shape index: {}]   ;;  %s2400_s14 = inlined_call_operand.<no memory space> [shape: f32[1], index: 14, kind: input, shape index: {}]   ;;  %s2401_s15 = inlined_call_operand.vmem [shape: f32[64,1], index: 15, kind: output, shape index: {}]  }
   0x1   :  { %2403 = sst [smem:[#allocation14_spill]] %s2389_s3 }
   0x2   :  { %2404 = sst [smem:[#allocation15_spill]] %s2391_s5 }
   0x3   :  { %2405 = sst [smem:[#allocation16_spill]] %s2395_s9 }
   0x4   :  { %2406 = sst [smem:[#allocation17_spill]] %s2399_s13 }
   0x5   :  { %2407 = sst [smem:[#allocation18_spill]] %s2401_s15 }
   0x6   :  { %20 = sst [smem:[#allocation2]] %s2400_s14 }
   0x7   :  { %21 = vsyncpa [#allocation4], 0 }
   0x8   :  { %22 = vsyncpa [#allocation6], 0 }
   0x9   :  { %23 = vsyncpa [#allocation9], 0  ;;  %s2257_s20 = smov 0  }
   0xa LB: > { %s2402_s21 = sadd.s32 4294967295, %s2163_s20   ;;  %p1519_p0 = scmp.ge.s32.totalorder %s2163_s20, 1  ;;  %s2163_s20 = sphi %s2257_s20, %s29_s20  }
   0xb   : > { %p380_p1 = scmp.lt.s32.totalorder %s2163_s20, 3  ;;  %p2267_p2 = scmp.eq.s32.totalorder %s2402_s21, 0 }
   0xc   : > { %s2409_s5 = sld [smem:[#allocation15_spill]]  ;;  %s2165_s29 = smov [#allocation5]  }
   0xd   : > { %p2274_p3 = pnand %p1519_p0, %p380_p1  ;;  %s2411_s9 = sld [smem:[#allocation16_spill]] }
   0xe   : > { %s416_s30 = sshll.u32 %s2165_s29, 4  ;;  %s2166_s17 = smov [#allocation8]   ;;  %s417_s30 = int_to_ptr.vmem [resolvable:$true] %s416_s30 }
   0xf   : > { %p1948_p4 = pneg %p2274_p3  ;;  %s450_s18 = sshll.u32 %s2166_s17, 4  ;;  %s451_s18 = int_to_ptr.vmem [resolvable:$true] %s450_s18 }
  0x10   : > { %s2167_s19 = smov 64   ;;  %s2168_s22 = smov 4  }
  0x11   : > { %p2285_p5 = pnand %p2267_p2, %p1948_p4  ;;  %s2413_s3 = sld [smem:[#allocation14_spill]] }
  0x12   : > { %s414_s24 = sshll.u32 %s2409_s5, 4  ;;  %s2169_s29 = smov 128   ;;  %s415_s24 = int_to_ptr.hbm [resolvable:$true] %s414_s24 }
  0x13   : > { %s448_s28 = sshll.u32 %s2411_s9, 4  ;;  %s2170_s21 = smov 8   ;;  %s449_s28 = int_to_ptr.hbm [resolvable:$true] %s448_s28 }
  0x14   : > { %1954 = dma.hbm_to_vmem [thread:$0]  (!%p2285_p5), %s415_s24, 1024, %s417_s30, [#allocation6], %s2167_s19, %s2167_s19, %s2168_s22  }
  0x15   : > { %1960 = dma.hbm_to_vmem [thread:$0]  (!%p2285_p5), %s449_s28, 2048, %s451_s18, [#allocation9], %s2169_s29, %s2169_s29, %s2170_s21  }
  0x16   : > { %s2171_s5 = smov [#allocation3]   ;;  %s431_s13 = sshll.u32 %s2393_s7, 4  ;;  %s432_s13 = int_to_ptr.hbm [resolvable:$true] %s431_s13 }
  0x17   : > { %s397_s27 = sshll.u32 %s2413_s3, 4  ;;  %s399_s9 = sshll.u32 %s2171_s5, 4  ;;  %s398_s27 = int_to_ptr.hbm [resolvable:$true] %s397_s27  ;;  %s400_s9 = int_to_ptr.vmem [resolvable:$true] %s399_s9 }
  0x18   : > { %1951 = dma.hbm_to_vmem [thread:$0]  (!%p2285_p5), %s398_s27, 1024, %s400_s9, [#allocation4], %s2167_s19, %s2167_s19, %s2168_s22  }
  0x19   : > { %s465_s23 = sshll.u32 %s2397_s11, 4  ;;  %s2172_s26 = smov [#allocation7]   ;;  %s466_s23 = int_to_ptr.hbm [resolvable:$true] %s465_s23 }
  0x1a   : > { %s433_s3 = sshll.u32 %s2172_s26, 4  ;;  %s2173_s28 = smov [#allocation10]   ;;  %s434_s3 = int_to_ptr.vmem [resolvable:$true] %s433_s3 }
  0x1b   : > { %1957 = dma.hbm_to_vmem [thread:$0]  (!%p2285_p5), %s432_s13, 1024, %s434_s3, [#allocation6], %s2167_s19, %s2167_s19, %s2168_s22  }
  0x1c   : > { %s467_s5 = sshll.u32 %s2173_s28, 4  ;;  %501 = sbr.rel (%p2274_p3) target bundleno = 1061 (0x425), region = 80  ;;  %s468_s5 = int_to_ptr.vmem [resolvable:$true] %s467_s5 }
  0x1d   : > { %1963 = dma.hbm_to_vmem [thread:$0]  (!%p2285_p5), %s466_s23, 4096, %s468_s5, [#allocation9], %s2169_s29, %s2169_s29, %s2170_s21  }
  0x21   : > { %2150 = dma.done.wait (%p2267_p2), [#allocation4], 1024  }
  0x22   : > { %2152 = vsyncadd (%p2267_p2), [#allocation4], 4294966272 }
  0x23   : > { %2154 = dma.done.wait (%p2267_p2), [#allocation6], 2048  }
  0x24   : > { %2156 = vsyncadd (%p2267_p2), [#allocation6], 4294965248 }
  0x25   : > { %2158 = dma.done.wait (%p2267_p2), [#allocation9], 6144  }
  0x26   : > { %2160 = vsyncadd (%p2267_p2), [#allocation9], 4294961152  ;;  %s2414_s3 = sadd.s32 4294967295, %s2163_s20   ;;  %v1847_v0 = vld [vmem:[%s2387_s1 + $0x8] sm:$0xff]  ;;  %v1855_v1 = vld [vmem:[#allocation3 + $0x38] sm:$0xff]  ;;  %vm617_vm0 = vcmask 261120  }
  0x27   : > { %s1532_s9 = sshll.u32 %s2414_s3, 2  ;;  %630 = vmatpush.bf16.msra.mxu0 %v1847_v0  ;;  %v1846_v2 = vld [vmem:[%s2387_s1] sm:$0xff]  ;;  %717 = vmatpush.bf16.msra.mxu1 %v1855_v1  ;;  %v1854_v3 = vld [vmem:[#allocation3 + $0x30] sm:$0xff]  ;;  %v1853_v5 = vld [vmem:[#allocation3 + $0x28] sm:$0xff]  ;;  %s2415_s25 = sld [smem:[#allocation17_spill]]  ;;  %vm1406_vm1 = vcmask 7168  }
  0x28   : > { %p571_p6 = scmp.lt.s32.totalorder %s1532_s9, 7  ;;  %v1852_v6 = vld [vmem:[#allocation3 + $0x20] sm:$0xff]  ;;  %v1851_v8 = vld [vmem:[#allocation3 + $0x18] sm:$0xff]  ;;  %v1850_v9 = vld [vmem:[#allocation3 + $0x10] sm:$0xff]  ;;  %s1367_s16 = sld [smem:[#allocation2]] }
  0x29   : > { %v1849_v10 = vld [vmem:[#allocation3 + $0x8] sm:$0xff]  ;;  %v1848_v11 = vld [vmem:[#allocation3] sm:$0xff]  ;;  %v1863_v12 = vld [vmem:[#allocation5 + $0x38] sm:$0xff]  ;;  %s2416_s22 = sld [smem:[#allocation18_spill]] }
  0x2a   : > { %s2418_s9 = smov (!%p571_p6, %s1532_s9), 7  ;;  %810 = vmatpush.bf16.msra.mxu2 %v1863_v12  ;;  %v1862_v14 = vld [vmem:[#allocation5 + $0x30] sm:$0xff]  ;;  %v1991_v15 = vld [vmem:[%s2388_s2] ss:$0 sm:$0xff]  ;;  %v1861_v16 = vld [vmem:[#allocation5 + $0x28] sm:$0xff] }
  0x2b   : > { %s1533_s13 = sshll.u32 %s2418_s9, 2  ;;  %631 = vmatpush.bf16.msra.mxu0 %v1846_v2  ;;  %718 = vmatpush.bf16.msra.mxu1 %v1854_v3  ;;  %v1860_v20 = vld [vmem:[#allocation5 + $0x20] sm:$0xff]  ;;  %v1859_v31 = vld [vmem:[#allocation5 + $0x18] sm:$0xff]  ;;  %v1858_v32 = vld [vmem:[#allocation5 + $0x10] sm:$0xff]  ;;  %s1535_s14 = sshll.u32 %s2418_s9, 3 }
  0x2c   : > { %s574_s19 = scalar_lea.vmem %s2386_s0, %s1533_s13  ;;  %v1857_v33 = vld [vmem:[#allocation5 + $0x8] sm:$0xff]  ;;  %v1856_v34 = vld [vmem:[#allocation5] sm:$0xff]  ;;  %v1871_v35 = vld [vmem:[#allocation7 + $0x38] sm:$0xff] }
  0x2d   : > { %v1844_v4 = vld [vmem:[%s574_s19] sm:$0xff]  ;;  %v1845_v7 = vld [vmem:[%s574_s19 + $0x8] sm:$0xff]  ;;  %903 = vmatpush.bf16.msra.mxu3 %v1871_v35  ;;  %v1870_v37 = vld [vmem:[#allocation7 + $0x30] sm:$0xff] }
  0x2e   : > { %1552 = vmatmul.msk.bf16.vlgmr.msra.gmra.mxu0 %vm617_vm0, %v1844_v4  ;;  %811 = vmatpush.bf16.msra.mxu2 %v1862_v14  ;;  %v1992_v38 = vld [vmem:[%s2390_s4] ss:$0 sm:$0xff]  ;;  %v1869_v39 = vld [vmem:[#allocation7 + $0x28] sm:$0xff]  ;;  %v1867_v54 = vld [vmem:[#allocation7 + $0x18] sm:$0xff] }
  0x2f   : > { %719 = vmatpush.bf16.msra.mxu1 %v1853_v5  ;;  %v1868_v43 = vld [vmem:[#allocation7 + $0x20] sm:$0xff]  ;;  %v1866_v55 = vld [vmem:[#allocation7 + $0x10] sm:$0xff]  ;;  %v1865_v56 = vld [vmem:[#allocation7 + $0x8] sm:$0xff]  ;;  %s580_s27 = scalar_lea.vmem %s2416_s22, %s1535_s14 }
  0x30   : > { %v1864_v57 = vld [vmem:[#allocation7] sm:$0xff]  ;;  %v1708_v58 = vld [vmem:[#allocation8 + $0x70] sm:$0xf]  ;;  %v1887_v59 = vld [vmem:[#allocation8 + $0x74] sm:$0xf0] }
  0x31   : > { %904 = vmatpush.bf16.msra.mxu3 %v1870_v37  ;;  %v1886_v60 = vld [vmem:[#allocation8 + $0x74] sm:$0xf]  ;;  %v1709_v62 = vor.u32 %v1887_v59, %v1708_v58  ;;  %v1710_v63 = vld [vmem:[#allocation8 + $0x78] sm:$0xf0]  ;;  %v1700_v0 = vld [vmem:[#allocation8 + $0x60] sm:$0xf] }
  0x32   : > { %812 = vmatpush.bf16.msra.mxu2 %v1861_v16  ;;  %v1885_v1 = vld [vmem:[#allocation8 + $0x64] sm:$0xf0]  ;;  %v1713_v2 = vor.u32 %v1886_v60, %v1710_v63  ;;  %v1884_v3 = vld [vmem:[#allocation8 + $0x64] sm:$0xf]  ;;  %v1702_v4 = vld [vmem:[#allocation8 + $0x68] sm:$0xf0] }
  0x33   : > { %720 = vmatpush.bf16.msra.mxu1 %v1852_v6  ;;  %1030 = vmatpush.bf16.msrb.mxu0 %v1709_v62  ;;  %v1701_v5 = vor.u32 %v1885_v1, %v1700_v0  ;;  %v1993_v6 = vld [vmem:[%s2392_s6] ss:$0 sm:$0xff]  ;;  %v1881_v16 = vld [vmem:[#allocation8 + $0x44] sm:$0xf0]  ;;  %v1678_v37 = vld [vmem:[#allocation8 + $0x38] sm:$0xf0] }
  0x34   : > { %v1903_v58 = vld [vmem:[#allocation10 + $0x74] sm:$0xf0]  ;;  %v1836_v59 = vld [vmem:[#allocation10 + $0xf0] sm:$0xf]  ;;  %v1902_v63 = vld [vmem:[#allocation10 + $0x74] sm:$0xf] }
  0x35   : > { %905 = vmatpush.bf16.msra.mxu3 %v1869_v39  ;;  %v1668_v39 = vld [vmem:[#allocation8 + $0x20] sm:$0xf]  ;;  %v1919_v62 = vld [vmem:[#allocation10 + $0xf4] sm:$0xf0]  ;;  %v1774_v0 = vld [vmem:[#allocation10 + $0x78] sm:$0xf0] }
  0x36   : > { %813 = vmatpush.bf16.msra.mxu2 %v1860_v20  ;;  %v1837_v1 = vor.u32 %v1919_v62, %v1836_v59  ;;  %v1804_v59 = vld [vmem:[#allocation10 + $0xb0] sm:$0xf] }
  0x37   : > { %721 = vmatpush.bf16.msra.mxu1 %v1851_v8  ;;  %v1692_v8 = vld [vmem:[#allocation8 + $0x50] sm:$0xf]  ;;  %1031 = vmatpush.bf16.msrb.mxu0 %v1701_v5  ;;  %v1764_v5 = vld [vmem:[#allocation10 + $0x60] sm:$0xf] }
  0x39   : > { %906 = vmatpush.bf16.msra.mxu3 %v1868_v43  ;;  %v1670_v43 = vld [vmem:[#allocation8 + $0x28] sm:$0xf0] }
  0x3a   : > { %814 = vmatpush.bf16.msra.mxu2 %v1859_v31 }
  0x3b   : > { %722 = vmatpush.bf16.msra.mxu1 %v1850_v9  ;;  %v1883_v9 = vld [vmem:[#allocation8 + $0x54] sm:$0xf0] }
  0x3c   : > { %v1693_v12 = vor.u32 %v1883_v9, %v1692_v8  ;;  %v1828_v8 = vld [vmem:[#allocation10 + $0xe0] sm:$0xf]  ;;  %v1917_v9 = vld [vmem:[#allocation10 + $0xe4] sm:$0xf0] }
  0x3d   : > { %907 = vmatpush.bf16.msra.mxu3 %v1867_v54 }
  0x3e   : > { %1553 = vmatmul.msk.bf16.gmra.mxu0 %vm617_vm0, %v1845_v7  ;;  %815 = vmatpush.bf16.msra.mxu2 %v1858_v32  ;;  %v1705_v7 = vor.u32 %v1884_v3, %v1702_v4  ;;  %v1918_v3 = vld [vmem:[#allocation10 + $0xf4] sm:$0xf]  ;;  %v1838_v4 = vld [vmem:[#allocation10 + $0xf8] sm:$0xf0] }
  0x3f   : > { %723 = vmatpush.bf16.msra.mxu1 %v1849_v10  ;;  %v1882_v10 = vld [vmem:[#allocation8 + $0x54] sm:$0xf]  ;;  %1032 = vmatpush.bf16.msrb.mxu0 %v1693_v12  ;;  %v1829_v12 = vor.u32 %v1917_v9, %v1828_v8  ;;  %v1909_v9 = vld [vmem:[#allocation10 + $0xa4] sm:$0xf0] }
  0x41   : > { %908 = vmatpush.bf16.msra.mxu3 %v1866_v55  ;;  %v1654_v55 = vld [vmem:[#allocation8 + $0x8] sm:$0xf0] }
  0x42   : > { %816 = vmatpush.bf16.msra.mxu2 %v1857_v33 }
  0x43   : > { %724 = vmatpush.bf16.msra.mxu1 %v1848_v11  ;;  %v1694_v11 = vld [vmem:[#allocation8 + $0x58] sm:$0xf0] }
  0x44   : > { %v1697_v14 = vor.u32 %v1882_v10, %v1694_v11  ;;  %v2350_v10 = vld [vmem:[%s2394_s8] ss:$0 sm:$0xff] }
  0x45   : > { %909 = vmatpush.bf16.msra.mxu3 %v1865_v56 }
  0x46   : > { %817 = vmatpush.bf16.msra.mxu2 %v1856_v34 }
  0x47   : > { %1049 = vmatpush.bf16.msrb.mxu1 %v1713_v2  ;;  %v1777_v2 = vor.u32 %v1902_v63, %v1774_v0  ;;  %v1742_v63 = vld [vmem:[#allocation10 + $0x38] sm:$0xf0]  ;;  %v1910_v0 = vld [vmem:[#allocation10 + $0xb4] sm:$0xf] }
  0x49   : > { %910 = vmatpush.bf16.msra.mxu3 %v1864_v57  ;;  %v1772_v57 = vld [vmem:[#allocation10 + $0x70] sm:$0xf] }
  0x4b   : > { %1050 = vmatpush.bf16.msrb.mxu1 %v1705_v7  ;;  %v1901_v7 = vld [vmem:[#allocation10 + $0x64] sm:$0xf0] }
  0x4c   : > { %v1765_v11 = vor.u32 %v1901_v7, %v1764_v5  ;;  %v1893_v5 = vld [vmem:[#allocation10 + $0x24] sm:$0xf0]  ;;  %v1796_v7 = vld [vmem:[#allocation10 + $0xa0] sm:$0xf] }
  0x4d   : > { %1297 = vmatpush.bf16.msrb.mxu3 %v1837_v1  ;;  %v1806_v1 = vld [vmem:[#allocation10 + $0xb8] sm:$0xf0] }
  0x4f   : > { %1051 = vmatpush.bf16.msrb.mxu1 %v1697_v14  ;;  %v1766_v14 = vld [vmem:[#allocation10 + $0x68] sm:$0xf0] }
  0x51   : > { %1298 = vmatpush.bf16.msrb.mxu3 %v1829_v12  ;;  %v1797_v12 = vor.u32 %v1909_v9, %v1796_v7 }
  0xab   : > { %v633_v13 = vpop.f32.mrf.mxu0 }
  0xac   : > { %v634_v17 = vadd.f32 %v1991_v15, %v633_v13 }
  0xae   : > { %v643_v21 = vmax.f32 %v634_v17, 0.0 }
  0xb3   : > { %v635_v18 = vpop.f32.mrf.mxu0 }
  0xb4   : > { %v636_v19 = vadd.f32 %v1991_v15, %v635_v18  ;;  %v1880_v18 = vld [vmem:[#allocation8 + $0x44] sm:$0xf] }
  0xb6   : > { %v644_v22 = vmax.f32 %v636_v19, 0.0  ;;  %v1686_v19 = vld [vmem:[#allocation8 + $0x48] sm:$0xf0] }
  0xb8   : > { %v647_v23 = vpack.c.bf16 %v644_v22, %v643_v21 }
  0xba   : > { %725 = vmatmul.bf16.vlgmr.msra.gmra.mxu1 %v647_v23 }
  0xbb   : > { %v638_v24 = vpop.f32.mrf.mxu0 }
  0xbc   : > { %v639_v25 = vadd.f32 %v1991_v15, %v638_v24  ;;  %v1689_v24 = vor.u32 %v1880_v18, %v1686_v19  ;;  %v1756_v18 = vld [vmem:[#allocation10 + $0x50] sm:$0xf] }
  0xbe   : > { %v645_v28 = vmax.f32 %v639_v25, 0.0  ;;  %v1676_v25 = vld [vmem:[#allocation8 + $0x30] sm:$0xf]  ;;  %1052 = vmatpush.bf16.msrb.mxu1 %v1689_v24  ;;  %v1898_v24 = vld [vmem:[#allocation10 + $0x54] sm:$0xf] }
  0xc3   : > { %v640_v26 = vpop.f32.mrf.mxu0 }
  0xc4   : > { %v641_v27 = vadd.f32 %v1991_v15, %v640_v26  ;;  %v1684_v15 = vld [vmem:[#allocation8 + $0x40] sm:$0xf]  ;;  %v1879_v26 = vld [vmem:[#allocation8 + $0x34] sm:$0xf0] }
  0xc5   : > { %v1685_v21 = vor.u32 %v1881_v16, %v1684_v15  ;;  %v1916_v16 = vld [vmem:[#allocation10 + $0xe4] sm:$0xf] }
  0xc6   : > { %v646_v29 = vmax.f32 %v641_v27, 0.0 }
  0xc7   : > { %1033 = vmatpush.bf16.msrb.mxu0 %v1685_v21  ;;  %v1820_v21 = vld [vmem:[#allocation10 + $0xd0] sm:$0xf] }
  0xc8   : > { %v648_v30 = vpack.c.bf16 %v646_v29, %v645_v28  ;;  %v1677_v28 = vor.u32 %v1879_v26, %v1676_v25  ;;  %v1758_v25 = vld [vmem:[#allocation10 + $0x58] sm:$0xf0]  ;;  %v1914_v26 = vld [vmem:[#allocation10 + $0xd4] sm:$0xf] }
  0xca   : > { %730 = vmatmul.bf16.gmra.mxu1 %v648_v30 }
  0xcb   : > { %1034 = vmatpush.bf16.msrb.mxu0 %v1677_v28 }
 0x137   : > { %v726_v36 = vpop.f32.mrf.mxu1 }
 0x138   : > { %v727_v40 = vadd.f32 %v1992_v38, %v726_v36  ;;  %v1878_v36 = vld [vmem:[#allocation8 + $0x34] sm:$0xf] }
 0x13a   : > { %v736_v44 = vmax.f32 %v727_v40, 0.0  ;;  %v1877_v40 = vld [vmem:[#allocation8 + $0x24] sm:$0xf0] }
 0x13f   : > { %v728_v41 = vpop.f32.mrf.mxu1 }
 0x140   : > { %v729_v42 = vadd.f32 %v1992_v38, %v728_v41  ;;  %v1876_v41 = vld [vmem:[#allocation8 + $0x24] sm:$0xf] }
 0x142   : > { %v737_v45 = vmax.f32 %v729_v42, 0.0  ;;  %v1669_v42 = vor.u32 %v1877_v40, %v1668_v39  ;;  %v1750_v39 = vld [vmem:[#allocation10 + $0x48] sm:$0xf0] }
 0x144   : > { %v740_v46 = vpack.c.bf16 %v737_v45, %v736_v44  ;;  %v1673_v44 = vor.u32 %v1876_v41, %v1670_v43  ;;  %v1660_v45 = vld [vmem:[#allocation8 + $0x10] sm:$0xf]  ;;  %1035 = vmatpush.bf16.msrb.mxu0 %v1669_v42  ;;  %v1912_v41 = vld [vmem:[#allocation10 + $0xc4] sm:$0xf]  ;;  %v1814_v42 = vld [vmem:[#allocation10 + $0xc8] sm:$0xf0] }
 0x146   : > { %818 = vmatmul.bf16.vlgmr.msra.gmra.mxu2 %v740_v46  ;;  %v1875_v46 = vld [vmem:[#allocation8 + $0x14] sm:$0xf0] }
 0x147   : > { %v731_v47 = vpop.f32.mrf.mxu1 }
 0x148   : > { %v732_v48 = vadd.f32 %v1992_v38, %v731_v47  ;;  %v1661_v47 = vor.u32 %v1875_v46, %v1660_v45  ;;  %v1740_v45 = vld [vmem:[#allocation10 + $0x30] sm:$0xf]  ;;  %v1895_v46 = vld [vmem:[#allocation10 + $0x34] sm:$0xf0] }
 0x14a   : > { %v738_v51 = vmax.f32 %v732_v48, 0.0  ;;  %v1874_v48 = vld [vmem:[#allocation8 + $0x14] sm:$0xf]  ;;  %1036 = vmatpush.bf16.msrb.mxu0 %v1661_v47 }
 0x14f   : > { %v733_v49 = vpop.f32.mrf.mxu1 }
 0x150   : > { %v734_v50 = vadd.f32 %v1992_v38, %v733_v49  ;;  %v1681_v38 = vor.u32 %v1878_v36, %v1678_v37  ;;  %v1662_v49 = vld [vmem:[#allocation8 + $0x18] sm:$0xf0]  ;;  %v1913_v37 = vld [vmem:[#allocation10 + $0xc4] sm:$0xf0] }
 0x152   : > { %v739_v52 = vmax.f32 %v734_v50, 0.0  ;;  %1053 = vmatpush.bf16.msrb.mxu1 %v1681_v38  ;;  %v1665_v50 = vor.u32 %v1874_v48, %v1662_v49  ;;  %v1896_v38 = vld [vmem:[#allocation10 + $0x44] sm:$0xf] }
 0x153   : > { %v1753_v48 = vor.u32 %v1896_v38, %v1750_v39 }
 0x154   : > { %v741_v53 = vpack.c.bf16 %v739_v52, %v738_v51  ;;  %v1652_v51 = vld [vmem:[#allocation8] sm:$0xf]  ;;  %v1873_v52 = vld [vmem:[#allocation8 + $0x4] sm:$0xf0] }
 0x155   : > { %v1653_v54 = vor.u32 %v1873_v52, %v1652_v51  ;;  %v1741_v51 = vor.u32 %v1895_v46, %v1740_v45 }
 0x156   : > { %823 = vmatmul.bf16.gmra.mxu2 %v741_v53  ;;  %1054 = vmatpush.bf16.msrb.mxu1 %v1673_v44  ;;  %v1872_v53 = vld [vmem:[#allocation8 + $0x4] sm:$0xf] }
 0x157   : > { %v1657_v56 = vor.u32 %v1872_v53, %v1654_v55  ;;  %1037 = vmatpush.bf16.msrb.mxu0 %v1653_v54 }
 0x15a   : > { %1055 = vmatpush.bf16.msrb.mxu1 %v1665_v50  ;;  %v2361_v50 = vor.u32 %v1912_v41, %v1814_v42  ;;  %v1782_v41 = vld [vmem:[#allocation10 + $0x88] sm:$0xf0] }
 0x15b   : > { %1316 = vmatpush.bf16.msra.mxu0 %v1777_v2 }
 0x15e   : > { %1056 = vmatpush.bf16.msrb.mxu1 %v1657_v56 }
 0x1c9   : > { %v819_v61 = vpop.f32.mrf.mxu2 }
 0x1ca   : > { %v820_v13 = vadd.f32 %v1993_v6, %v819_v61  ;;  %v1773_v61 = vor.u32 %v1903_v58, %v1772_v57 }
 0x1cc   : > { %v829_v22 = vmax.f32 %v820_v13, 0.0  ;;  %1278 = vmatpush.bf16.msrb.mxu2 %v1773_v61  ;;  %v1900_v13 = vld [vmem:[#allocation10 + $0x64] sm:$0xf]  ;;  %v1894_v61 = vld [vmem:[#allocation10 + $0x34] sm:$0xf] }
 0x1cd   : > { %v1769_v15 = vor.u32 %v1900_v13, %v1766_v14  ;;  %v1745_v2 = vor.u32 %v1894_v61, %v1742_v63  ;;  %v1908_v14 = vld [vmem:[#allocation10 + $0xa4] sm:$0xf] }
 0x1cf   : > { %1317 = vmatpush.bf16.msra.mxu0 %v1769_v15  ;;  %v1798_v15 = vld [vmem:[#allocation10 + $0xa8] sm:$0xf0] }
 0x1d0   : > { %1279 = vmatpush.bf16.msrb.mxu2 %v1765_v11  ;;  %v1734_v11 = vld [vmem:[#allocation10 + $0x28] sm:$0xf0] }
 0x1d1   : > { %v821_v17 = vpop.f32.mrf.mxu2 }
 0x1d2   : > { %v822_v20 = vadd.f32 %v1993_v6, %v821_v17  ;;  %v1830_v17 = vld [vmem:[#allocation10 + $0xe8] sm:$0xf0] }
 0x1d3   : > { %v2353_v19 = vor.u32 %v1916_v16, %v1830_v17  ;;  %v1724_v16 = vld [vmem:[#allocation10 + $0x10] sm:$0xf]  ;;  %v1801_v17 = vor.u32 %v1908_v14, %v1798_v15 }
 0x1d4   : > { %v830_v23 = vmax.f32 %v822_v20, 0.0  ;;  %v1899_v20 = vld [vmem:[#allocation10 + $0x54] sm:$0xf0] }
 0x1d6   : > { %v833_v27 = vpack.c.bf16 %v830_v23, %v829_v22  ;;  %v1915_v22 = vld [vmem:[#allocation10 + $0xd4] sm:$0xf0]  ;;  %v1757_v23 = vor.u32 %v1899_v20, %v1756_v18 }
 0x1d7   : > { %v1821_v28 = vor.u32 %v1915_v22, %v1820_v21  ;;  %v1891_v18 = vld [vmem:[#allocation10 + $0x14] sm:$0xf0]  ;;  %v1788_v21 = vld [vmem:[#allocation10 + $0x90] sm:$0xf] }
 0x1d8   : > { %911 = vmatmul.bf16.vlgmr.msra.gmra.mxu3 %v833_v27  ;;  %1280 = vmatpush.bf16.msrb.mxu2 %v1757_v23  ;;  %v1725_v20 = vor.u32 %v1891_v18, %v1724_v16  ;;  %v1907_v22 = vld [vmem:[#allocation10 + $0x94] sm:$0xf0]  ;;  %v1890_v23 = vld [vmem:[#allocation10 + $0x14] sm:$0xf] }
 0x1d9   : > { %v824_v29 = vpop.f32.mrf.mxu2  ;;  %1299 = vmatpush.bf16.msrb.mxu3 %v1821_v28 }
 0x1da   : > { %v825_v30 = vadd.f32 %v1993_v6, %v824_v29  ;;  %v1761_v29 = vor.u32 %v1898_v24, %v1758_v25  ;;  %v1789_v24 = vor.u32 %v1907_v22, %v1788_v21  ;;  %v1726_v25 = vld [vmem:[#allocation10 + $0x18] sm:$0xf0]  ;;  %v1366_v21 = vld [vmem:[%s2415_s25] sm:$0x3] }
 0x1db   : > { %v1729_v28 = vor.u32 %v1890_v23, %v1726_v25 }
 0x1dc   : > { %v831_v33 = vmax.f32 %v825_v30, 0.0  ;;  %v1822_v30 = vld [vmem:[#allocation10 + $0xd8] sm:$0xf0]  ;;  %1318 = vmatpush.bf16.msra.mxu0 %v1761_v29 }
 0x1e0   : > { %1319 = vmatpush.bf16.msra.mxu0 %v1753_v48 }
 0x1e1   : > { %v826_v31 = vpop.f32.mrf.mxu2 }
 0x1e2   : > { %v827_v32 = vadd.f32 %v1993_v6, %v826_v31  ;;  %v2345_v6 = vor.u32 %v1918_v3, %v1838_v4  ;;  %v1748_v31 = vld [vmem:[#allocation10 + $0x40] sm:$0xf]  ;;  %v1809_v3 = vor.u32 %v1910_v0, %v1806_v1 }
 0x1e3   : > { %v1732_v4 = vld [vmem:[#allocation10 + $0x20] sm:$0xf] }
 0x1e4   : > { %v832_v34 = vmax.f32 %v827_v32, 0.0  ;;  %1335 = vmatpush.bf16.msra.mxu1 %v2345_v6  ;;  %v1897_v32 = vld [vmem:[#allocation10 + $0x44] sm:$0xf0]  ;;  %1320 = vmatpush.bf16.msra.mxu0 %v1745_v2  ;;  %v1733_v8 = vor.u32 %v1893_v5, %v1732_v4 }
 0x1e5   : > { %v1749_v40 = vor.u32 %v1897_v32, %v1748_v31  ;;  %v1889_v31 = vld [vmem:[#allocation10 + $0x4] sm:$0xf0]  ;;  %v1780_v32 = vld [vmem:[#allocation10 + $0x80] sm:$0xf] }
 0x1e6   : > { %v834_v35 = vpack.c.bf16 %v832_v34, %v831_v33  ;;  %v2357_v34 = vor.u32 %v1914_v26, %v1822_v30  ;;  %v1906_v26 = vld [vmem:[#allocation10 + $0x94] sm:$0xf]  ;;  %v1716_v30 = vld [vmem:[#allocation10] sm:$0xf] }
 0x1e7   : > { %1281 = vmatpush.bf16.msrb.mxu2 %v1749_v40  ;;  %v1904_v40 = vld [vmem:[#allocation10 + $0x84] sm:$0xf] }
 0x1e8   : > { %916 = vmatmul.bf16.gmra.mxu3 %v834_v35  ;;  %1336 = vmatpush.bf16.msra.mxu1 %v2353_v19  ;;  %v1812_v35 = vld [vmem:[#allocation10 + $0xc0] sm:$0xf]  ;;  %v1785_v42 = vor.u32 %v1904_v40, %v1782_v41 }
 0x1e9   : > { %v1813_v47 = vor.u32 %v1913_v37, %v1812_v35  ;;  %v1905_v35 = vld [vmem:[#allocation10 + $0x84] sm:$0xf0]  ;;  %v1718_v37 = vld [vmem:[#allocation10 + $0x8] sm:$0xf0] }
 0x1ea   : > { %v1781_v38 = vor.u32 %v1905_v35, %v1780_v32 }
 0x1eb   : > { %1300 = vmatpush.bf16.msrb.mxu3 %v1813_v47  ;;  %1282 = vmatpush.bf16.msrb.mxu2 %v1741_v51 }
 0x1ec   : > { %1337 = vmatpush.bf16.msra.mxu1 %v2357_v34 }
 0x1ef   : > { %1283 = vmatpush.bf16.msrb.mxu2 %v1733_v8  ;;  %v1112_v8 = vld [vmem:[%s2398_s12] sm:$0x3] }
 0x1f0   : > { %1338 = vmatpush.bf16.msra.mxu1 %v2361_v50  ;;  %v1115_v9 = vperm.slane %v1112_v8, 1 }
 0x1f3   : > { %1284 = vmatpush.bf16.msrb.mxu2 %v1725_v20 }
 0x1f4   : > { %1339 = vmatpush.bf16.msra.mxu1 %v1809_v3 }
 0x1f8   : > { %1340 = vmatpush.bf16.msra.mxu1 %v1801_v17 }
 0x25b   : > { %v912_v60 = vpop.f32.mrf.mxu3 }
 0x25c   : > { %v913_v27 = vadd.f32 %v2350_v10, %v912_v60  ;;  %v1911_v60 = vld [vmem:[#allocation10 + $0xb4] sm:$0xf0] }
 0x25d   : > { %v1805_v62 = vor.u32 %v1911_v60, %v1804_v59 }
 0x25e   : > { %v922_v43 = vmax.f32 %v913_v27, 0.0  ;;  %v1790_v27 = vld [vmem:[#allocation10 + $0x98] sm:$0xf0] }
 0x25f   : > { %1301 = vmatpush.bf16.msrb.mxu3 %v1805_v62  ;;  %v1793_v29 = vor.u32 %v1906_v26, %v1790_v27  ;;  %v1377_v26 = vperm.slane %v1366_v21, 0  ;;  %v1378_v27 = vperm.slane %v1366_v21, 1 }
 0x261   : > { %1341 = vmatpush.bf16.msra.mxu1 %v1793_v29 }
 0x263   : > { %v914_v33 = vpop.f32.mrf.mxu3  ;;  %1302 = vmatpush.bf16.msrb.mxu3 %v1797_v12  ;;  %v1114_v12 = vperm.slane %v1112_v8, 0 }
 0x264   : > { %v915_v36 = vadd.f32 %v2350_v10, %v914_v33  ;;  %v1717_v33 = vor.u32 %v1889_v31, %v1716_v30 }
 0x265   : > { %1342 = vmatpush.bf16.msra.mxu1 %v1785_v42 }
 0x266   : > { %v923_v44 = vmax.f32 %v915_v36, 0.0  ;;  %v1888_v36 = vld [vmem:[#allocation10 + $0x4] sm:$0xf]  ;;  %1285 = vmatpush.bf16.msrb.mxu2 %v1717_v33 }
 0x267   : > { %1303 = vmatpush.bf16.msrb.mxu3 %v1789_v24  ;;  %v1721_v39 = vor.u32 %v1888_v36, %v1718_v37 }
 0x268   : > { %v926_v49 = vpack.c.bf16 %v923_v44, %v922_v43  ;;  %v944_v43 = vld [vmem:[%s2396_s10] sm:$0x3] }
 0x269   : > { %v946_v46 = vperm.slane %v944_v43, 0  ;;  %v947_v47 = vperm.slane %v944_v43, 1 }
 0x26a   : > { %1038 = vmatmul.bf16.vlgmr.msrb.gmra.mxu0 %v926_v49  ;;  %1057 = vmatmul.bf16.vlgmr.msrb.gmra.mxu1 %v926_v49 }
 0x26b   : > { %v917_v52 = vpop.f32.mrf.mxu3  ;;  %1304 = vmatpush.bf16.msrb.mxu3 %v1781_v38  ;;  %1920 = vmatpush.bf16.msra.mxu2 %v2345_v6 }
 0x26c   : > { %v918_v53 = vadd.f32 %v2350_v10, %v917_v52 }
 0x26e   : > { %v924_v56 = vmax.f32 %v918_v53, 0.0 }
 0x26f   : > { %1921 = vmatpush.bf16.msra.mxu2 %v2353_v19 }
 0x273   : > { %v919_v54 = vpop.f32.mrf.mxu3  ;;  %1922 = vmatpush.bf16.msra.mxu2 %v2357_v34 }
 0x274   : > { %v920_v55 = vadd.f32 %v2350_v10, %v919_v54  ;;  %v1892_v10 = vld [vmem:[#allocation10 + $0x24] sm:$0xf] }
 0x275   : > { %v1737_v13 = vor.u32 %v1892_v10, %v1734_v11 }
 0x276   : > { %v925_v57 = vmax.f32 %v920_v55, 0.0 }
 0x277   : > { %1321 = vmatpush.bf16.msra.mxu0 %v1737_v13  ;;  %1923 = vmatpush.bf16.msra.mxu2 %v2361_v50 }
 0x278   : > { %v927_v58 = vpack.c.bf16 %v925_v57, %v924_v56 }
 0x27a   : > { %1043 = vmatmul.bf16.gmra.mxu0 %v927_v58  ;;  %1062 = vmatmul.bf16.gmra.mxu1 %v927_v58 }
 0x27b   : > { %1322 = vmatpush.bf16.msra.mxu0 %v1729_v28  ;;  %1924 = vmatpush.bf16.msra.mxu2 %v1809_v3 }
 0x27f   : > { %1323 = vmatpush.bf16.msra.mxu0 %v1721_v39  ;;  %1925 = vmatpush.bf16.msra.mxu2 %v1801_v17 }
 0x283   : > { %1926 = vmatpush.bf16.msra.mxu2 %v1793_v29 }
 0x287   : > { %1927 = vmatpush.bf16.msra.mxu2 %v1785_v42 }
 0x2e7   : > { %v1039_v44 = vpop.f32.mrf.mxu0  ;;  %v1058_v45 = vpop.f32.mrf.mxu1 }
 0x2e8   : > { %v1040_v48 = vadd.f32 %v1039_v44, %v946_v46  ;;  %v1059_v49 = vadd.f32 %v1058_v45, %v947_v47 }
 0x2ea   : > { %v1068_v34 = vmax.f32 %v1040_v48, 0.0  ;;  %v1069_v50 = vmax.f32 %v1059_v49, 0.0 }
 0x2ef   : > { %v1041_v6 = vpop.f32.mrf.mxu0  ;;  %v1060_v51 = vpop.f32.mrf.mxu1 }
 0x2f0   : > { %v1042_v19 = vadd.f32 %v1041_v6, %v946_v46  ;;  %v1061_v52 = vadd.f32 %v1060_v51, %v947_v47 }
 0x2f2   : > { %v1070_v53 = vmax.f32 %v1042_v19, 0.0  ;;  %v1071_v54 = vmax.f32 %v1061_v52, 0.0 }
 0x2f4   : > { %v1076_v55 = vpack.c.bf16 %v1070_v53, %v1068_v34  ;;  %v1077_v56 = vpack.c.bf16 %v1071_v54, %v1069_v50 }
 0x2f6   : > { %1286 = vmatmul.bf16.vlgmr.msrb.gmra.mxu2 %v1076_v55  ;;  %1305 = vmatmul.bf16.vlgmr.msrb.gmra.mxu3 %v1077_v56 }
 0x2f7   : > { %1324 = vmatmul.bf16.vlgmr.msra.gmra.mxu0 %v1076_v55  ;;  %1343 = vmatmul.bf16.vlgmr.msra.gmra.mxu1 %v1077_v56  ;;  %v1044_v57 = vpop.f32.mrf.mxu0  ;;  %v1063_v58 = vpop.f32.mrf.mxu1 }
 0x2f8   : > { %v1045_v59 = vadd.f32 %v1044_v57, %v946_v46  ;;  %v1064_v60 = vadd.f32 %v1063_v58, %v947_v47 }
 0x2fa   : > { %v1072_v1 = vmax.f32 %v1045_v59, 0.0  ;;  %v1073_v2 = vmax.f32 %v1064_v60, 0.0 }
 0x2ff   : > { %v1046_v61 = vpop.f32.mrf.mxu0  ;;  %v1065_v62 = vpop.f32.mrf.mxu1 }
 0x300   : > { %v1047_v63 = vadd.f32 %v1046_v61, %v946_v46  ;;  %v1066_v0 = vadd.f32 %v1065_v62, %v947_v47 }
 0x302   : > { %v1074_v3 = vmax.f32 %v1047_v63, 0.0  ;;  %v1075_v4 = vmax.f32 %v1066_v0, 0.0 }
 0x304   : > { %v1078_v5 = vpack.c.bf16 %v1074_v3, %v1072_v1  ;;  %v1079_v7 = vpack.c.bf16 %v1075_v4, %v1073_v2 }
 0x306   : > { %1291 = vmatmul.bf16.gmra.mxu2 %v1078_v5  ;;  %1310 = vmatmul.bf16.gmra.mxu3 %v1079_v7 }
 0x307   : > { %1329 = vmatmul.bf16.gmra.mxu0 %v1078_v5 }
 0x316   : > { %1348 = vmatmul.bf16.vlgmr.msra.gmra.mxu2 %v1079_v7 }
 0x374   : > { %v1325_v10 = vpop.f32.mrf.mxu0  ;;  %v1344_v13 = vpop.f32.mrf.mxu1 }
 0x375   : > { %v1326_v11 = vadd.f32 %v1325_v10, %v1115_v9 }
 0x377   : > { %v1345_v16 = vadd.f32 %v1344_v13, %v1326_v11 }
 0x379   : > { %v1287_v14 = vpop.f32.mrf.mxu2  ;;  %v1306_v15 = vpop.f32.mrf.mxu3  ;;  %v1355_v22 = vmax.f32 %v1345_v16, 0.0 }
 0x37a   : > { %v1288_v17 = vadd.f32 %v1287_v14, %v1114_v12 }
 0x37c   : > { %v1307_v18 = vadd.f32 %v1306_v15, %v1288_v17  ;;  %v1327_v20 = vpop.f32.mrf.mxu0  ;;  %v1346_v28 = vpop.f32.mrf.mxu1 }
 0x37d   : > { %v1328_v24 = vadd.f32 %v1327_v20, %v1115_v9 }
 0x37e   : > { %v1354_v23 = vmax.f32 %v1307_v18, 0.0 }
 0x37f   : > { %v1347_v30 = vadd.f32 %v1346_v28, %v1328_v24 }
 0x380   : > { %v1362_v25 = vpack.c.bf16 %v1355_v22, %v1354_v23 }
 0x381   : > { %v1289_v29 = vpop.f32.mrf.mxu2  ;;  %v1308_v35 = vpop.f32.mrf.mxu3  ;;  %v1357_v39 = vmax.f32 %v1347_v30, 0.0 }
 0x382   : > { %v1290_v31 = vadd.f32 %v1289_v29, %v1114_v12  ;;  %v1368_v32 = vunpack.c.l.bf16 %v1362_v25  ;;  %v1369_v33 = vunpack.c.h.bf16 %v1362_v25 }
 0x384   : > { %v1309_v36 = vadd.f32 %v1308_v35, %v1290_v31  ;;  %v1381_v37 = vmul.f32 %v1377_v26, %v1368_v32  ;;  %v1382_v38 = vmul.f32 %v1378_v27, %v1369_v33  ;;  %v1330_v6 = vpop.f32.mrf.mxu0 }
 0x385   : > { %v1331_v52 = vadd.f32 %v1330_v6, %v1115_v9 }
 0x386   : > { %v1356_v40 = vmax.f32 %v1309_v36, 0.0  ;;  %v1389_v41 = vadd.f32 %v1382_v38, %v1381_v37 }
 0x388   : > { %v1363_v42 = vpack.c.bf16 %v1357_v39, %v1356_v40  ;;  %1390 = vadd.xlane.f32.xlu0 %v1389_v41 }
 0x389   : > { %v1292_v43 = vpop.f32.mrf.mxu2  ;;  %v1311_v19 = vpop.f32.mrf.mxu3 }
 0x38a   : > { %v1370_v44 = vunpack.c.l.bf16 %v1363_v42  ;;  %v1371_v45 = vunpack.c.h.bf16 %v1363_v42  ;;  %v1293_v51 = vadd.f32 %v1292_v43, %v1114_v12 }
 0x38c   : > { %v1383_v46 = vmul.f32 %v1377_v26, %v1370_v44  ;;  %v1384_v47 = vmul.f32 %v1378_v27, %v1371_v45  ;;  %v1312_v34 = vadd.f32 %v1311_v19, %v1293_v51  ;;  %v1332_v57 = vpop.f32.mrf.mxu0 }
 0x38d   : > { %v1333_v60 = vadd.f32 %v1332_v57, %v1115_v9  ;;  %v1401_v9 = vstv %s1367_s16 }
 0x38e   : > { %v1392_v48 = vadd.f32 %v1384_v47, %v1383_v46  ;;  %v1358_v54 = vmax.f32 %v1312_v34, 0.0 }
 0x390   : > { %1393 = vadd.xlane.f32.xlu0 %v1392_v48 }
 0x391   : > { %v1294_v49 = vpop.f32.mrf.mxu2  ;;  %v1313_v59 = vpop.f32.mrf.mxu3 }
 0x392   : > { %v1295_v55 = vadd.f32 %v1294_v49, %v1114_v12 }
 0x394   : > { %v1314_v61 = vadd.f32 %v1313_v59, %v1295_v55 }
 0x396   : > { %v1360_v4 = vmax.f32 %v1314_v61, 0.0 }
 0x399   : > { %v1349_v50 = vpop.f32.mrf.mxu2 }
 0x39a   : > { %v1350_v53 = vadd.f32 %v1349_v50, %v1331_v52 }
 0x39c   : > { %v1359_v56 = vmax.f32 %v1350_v53, 0.0 }
 0x39e   : > { %v1364_v58 = vpack.c.bf16 %v1359_v56, %v1358_v54 }
 0x3a0   : > { %v1372_v62 = vunpack.c.l.bf16 %v1364_v58  ;;  %v1373_v63 = vunpack.c.h.bf16 %v1364_v58 }
 0x3a1   : > { %v1351_v0 = vpop.f32.mrf.mxu2 }
 0x3a2   : > { %v1352_v1 = vadd.f32 %v1351_v0, %v1333_v60  ;;  %v1385_v2 = vmul.f32 %v1377_v26, %v1372_v62  ;;  %v1386_v3 = vmul.f32 %v1378_v27, %v1373_v63 }
 0x3a4   : > { %v1361_v5 = vmax.f32 %v1352_v1, 0.0  ;;  %v1395_v7 = vadd.f32 %v1386_v3, %v1385_v2 }
 0x3a6   : > { %v1365_v8 = vpack.c.bf16 %v1361_v5, %v1360_v4  ;;  %1396 = vadd.xlane.f32.xlu1 %v1395_v7 }
 0x3a8   : > { %v1374_v10 = vunpack.c.l.bf16 %v1365_v8  ;;  %v1375_v11 = vunpack.c.h.bf16 %v1365_v8 }
 0x3aa   : > { %v1387_v12 = vmul.f32 %v1377_v26, %v1374_v10  ;;  %v1388_v13 = vmul.f32 %v1378_v27, %v1375_v11 }
 0x3ac   : > { %v1398_v14 = vadd.f32 %v1388_v13, %v1387_v12 }
 0x3ae   : > { %1399 = vadd.xlane.f32.xlu1 %v1398_v14 }
 0x3fb   : > { %v1391_v15 = vpop.xlane.xlu0 %1390 }
 0x3fc   : > { %v1402_v16 = vadd.f32 %v1401_v9, %v1391_v15 }
 0x3fe   : > { %1407 = vst.msk [vmem:[%s580_s27] sm:$0xff] %vm1406_vm1, %v1402_v16 }
 0x403   : > { %v1394_v17 = vpop.xlane.xlu0 %1393 }
 0x404   : > { %v1403_v18 = vadd.f32 %v1401_v9, %v1394_v17 }
 0x406   : > { %1408 = vst.msk [vmem:[%s580_s27 + $0x8] sm:$0xff] %vm1406_vm1, %v1403_v18 }
 0x419   : > { %v1397_v20 = vpop.xlane.xlu1 %1396 }
 0x41a   : > { %v1404_v21 = vadd.f32 %v1401_v9, %v1397_v20 }
 0x41c   : > { %1409 = vst.msk [vmem:[%s580_s27 + $0x10] sm:$0xff] %vm1406_vm1, %v1404_v21 }
 0x421   : > { %v1400_v22 = vpop.xlane.xlu1 %1399 }
 0x422   : > { %v1405_v23 = vadd.f32 %v1401_v9, %v1400_v22 }
 0x424   : > { %1410 = vst.msk [vmem:[%s580_s27 + $0x18] sm:$0xff] %vm1406_vm1, %v1405_v23 }
 0x425 PF: > { %s29_s20 = sadd.s32 1, %s2163_s20  }
 0x426   : > { %p26_p7 = scmp.ge.s32.totalorder %s29_s20, 4  }
 0x428   :  { %28 = sbr.rel (!%p26_p7) target bundleno = 10 (0xa), region = 131 }
 0x42d   :  { %1433 = vsyncpa [#allocation4], 1 }
 0x42e   :  { %1435 = vsyncpa [#allocation4 + $0x1], 1 }
 0x42f   :  { %1436 = vsyncpa [#allocation6], 1 }
 0x430   :  { %1437 = vsyncpa [#allocation9], 1 }

</bundles_post_ra>
